<compile_context>
chip_gen: v6e
topology: v6e:2x2x1
jax: 0.10.0
libtpu: 0.0.40
codegen_flags: <defaults>
</compile_context>

<pallas_src>
import jax
import jax.numpy as jnp
from jax import lax
from jax.experimental import pallas as pl
from jax.experimental.pallas import tpu as pltpu

BN_EPS = 1e-5
LANE = 128


def _make_eigf_kernel(num_hlayers, num_hu, n_valid, n_pad):
    """Kernel processing ONE filter's full MLP on the whole (padded) batch."""
    inv_n = 1.0 / float(n_valid)
    use_bf16_mxu = num_hu >= 128  # real hidden widths: feed the MXU bf16 operands

    def kernel(*refs):
        if num_hlayers > 0:
            (x_ref, w_first_ref, p_first_ref, w_hidden_ref, p_hidden_ref,
             w_last_ref, p_last_ref, out_ref) = refs
        else:
            (x_ref, w_first_ref, p_first_ref,
             w_last_ref, p_last_ref, out_ref) = refs

        # Batch lives on the lane axis; padding lanes are masked out of BN stats.
        lane_ids = lax.broadcasted_iota(jnp.int32, (1, n_pad), 1)
        valid = lane_ids < n_valid  # (1, n_pad)

        def bn_relu(h, packed):
            # packed: (out_f, 3) columns = [linear bias, bn gamma, bn beta]
            b = packed[:, 0:1]
            g = packed[:, 1:2]
            beta = packed[:, 2:3]
            h = h + b
            hm = jnp.where(valid, h, 0.0)
            mean = jnp.sum(hm, axis=1, keepdims=True) * inv_n        # lane reduce (XLU)
            msq = jnp.sum(hm * h, axis=1, keepdims=True) * inv_n
            var = msq - mean * mean                                  # biased var, single pass
            scale = g * lax.rsqrt(var + BN_EPS)                      # EUP
            shift = beta - mean * scale
            return jnp.maximum(h * scale + shift, 0.0)               # fused scale/shift + ReLU

        x = x_ref[...].astype(jnp.float32)                           # (1, n_pad)

        # Layer 0: 1 -> hu. K=1 contraction == broadcast multiply (VPU).
        h = w_first_ref[...].astype(jnp.float32) * x                 # (hu,1)*(1,N) -> (hu,N)
        h = bn_relu(h, p_first_ref[...].astype(jnp.float32))

        # Hidden layers hu -> hu, stacked params walked by a bounded loop.
        if num_hlayers > 0:
            def body(l, h):
                w = w_hidden_ref[l]                                  # (hu, hu)  (out,in)
                p = p_hidden_ref[l].astype(jnp.float32)              # (hu, 3)
                if use_bf16_mxu:
                    hn = jnp.dot(w.astype(jnp.bfloat16), h.astype(jnp.bfloat16),
                                 preferred_element_type=jnp.float32)
                else:
                    hn = jnp.dot(w.astype(jnp.float32), h,
                                 preferred_element_type=jnp.float32)
                return bn_relu(hn, p)

            h = lax.fori_loop(0, num_hlayers, body, h,
                              unroll=num_hlayers <= 4)

        # Last layer: hu -> 1. Tiny GEMV kept off the MXU: VPU mul + sublane reduce.
        w_last = w_last_ref[...].astype(jnp.float32)                 # (hu, 1)
        hl = jnp.sum(w_last * h, axis=0, keepdims=True)              # (1, n_pad)
        hl = bn_relu(hl, p_last_ref[...].astype(jnp.float32))

        out_ref[...] = hl.astype(out_ref.dtype)                      # lane-dense store

    return kernel


def eigf_filters_forward(evs, w_first, p_first, w_hidden, p_hidden, w_last, p_last):
    """Apply all `filters` eigf MLPs to a shared eigenvalue vector.

    evs:      (N,) or (N, 1) float32 eigenvalues.
    w_first:  (F, hu, 1)      p_first:  (F, hu, 3)   columns [bias, gamma, beta]
    w_hidden: (F, L, hu, hu)  p_hidden: (F, L, hu, 3)
    w_last:   (F, hu, 1)      p_last:   (F, 1, 3)
    returns:  (F, N) float32  == torch `evs_transformed`.
    """
    evs = jnp.asarray(evs, jnp.float32).reshape(-1)
    n = evs.shape[0]
    n_pad = max(LANE, ((n + LANE - 1) // LANE) * LANE)
    x = jnp.zeros((1, n_pad), jnp.float32).at[0, :n].set(evs)

    num_filters, num_hu, _ = w_first.shape
    num_hlayers = int(w_hidden.shape[1])

    kernel = _make_eigf_kernel(num_hlayers, num_hu, n, n_pad)

    inputs = [x, w_first, p_first]
    in_specs = [
        pl.BlockSpec((1, n_pad), lambda f: (0, 0)),
        pl.BlockSpec((None, num_hu, 1), lambda f: (f, 0, 0)),
        pl.BlockSpec((None, num_hu, 3), lambda f: (f, 0, 0)),
    ]
    if num_hlayers > 0:
        inputs += [w_hidden, p_hidden]
        in_specs += [
            pl.BlockSpec((None, num_hlayers, num_hu, num_hu), lambda f: (f, 0, 0, 0)),
            pl.BlockSpec((None, num_hlayers, num_hu, 3), lambda f: (f, 0, 0, 0)),
        ]
    inputs += [w_last, p_last]
    in_specs += [
        pl.BlockSpec((None, num_hu, 1), lambda f: (f, 0, 0)),
        pl.BlockSpec((None, 1, 3), lambda f: (f, 0, 0)),
    ]
    out_spec = pl.BlockSpec((None, 1, n_pad), lambda f: (f, 0, 0))
    out_shape = jax.ShapeDtypeStruct((num_filters, 1, n_pad), jnp.float32)

    # Explicit VMEM budget (double-buffered per-filter params + resident activations).
    param_bytes = sum(int(a.size) * a.dtype.itemsize for a in inputs[1:])
    per_filter_param_bytes = max(param_bytes // num_filters, 1)
    act_bytes = 4 * num_hu * n_pad
    io_bytes = 4 * n_pad * 2
    vmem_limit = int(min(100 * (1 << 20),
                         4 * per_filter_param_bytes + 8 * act_bytes + 4 * io_bytes + (2 << 20)))

    flops = num_filters * n * (
        2 * num_hu                                   # first layer
        + num_hlayers * 2 * num_hu * num_hu          # hidden matmuls
        + 2 * num_hu                                 # last layer
        + 8 * num_hu * (num_hlayers + 1) + 8)        # BN + ReLU
    cost = pl.CostEstimate(
        flops=int(flops),
        transcendentals=int(num_filters * (num_hu * (num_hlayers + 1) + 1)),
        bytes_accessed=int(param_bytes + 4 * n_pad + 4 * num_filters * n_pad),
    )

    out = pl.pallas_call(
        kernel,
        out_shape=out_shape,
        grid=(num_filters,),
        in_specs=in_specs,
        out_specs=out_spec,
        compiler_params=pltpu.CompilerParams(
            dimension_semantics=("parallel",),
            vmem_limit_bytes=vmem_limit,
        ),
        cost_estimate=cost,
    )(*inputs)

    return out.reshape(num_filters, n_pad)[:, :n]


def init_params(key, num_filters, num_hlayers, num_hu):
    """Deterministic parameter init in the packed / stacked kernel layout."""
    def pack_bgb(kb, kg, ke, prefix, out_f):
        b = 0.1 * jax.random.normal(kb, prefix + (out_f,), jnp.float32)
        g = 1.0 + 0.1 * jax.random.normal(kg, prefix + (out_f,), jnp.float32)
        beta = 0.1 * jax.random.normal(ke, prefix + (out_f,), jnp.float32)
        return jnp.stack([b, g, beta], axis=-1)      # (..., out_f, 3)

    F, L, hu = num_filters, num_hlayers, num_hu
    k = jax.random.split(key, 12)
    w_first = 0.1 * jax.random.normal(k[0], (F, hu, 1), jnp.float32)
    p_first = pack_bgb(k[1], k[2], k[3], (F,), hu)
    if L > 0:
        w_hidden = 0.1 * jax.random.normal(k[4], (F, L, hu, hu), jnp.float32)
        p_hidden = pack_bgb(k[5], k[6], k[7], (F, L), hu)
    else:
        w_hidden = jnp.zeros((F, 0, hu, hu), jnp.float32)
        p_hidden = jnp.zeros((F, 0, hu, 3), jnp.float32)
    w_last = 0.1 * jax.random.normal(k[8], (F, hu, 1), jnp.float32)
    p_last = pack_bgb(k[9], k[10], k[11], (F,), 1)
    return w_first, p_first, w_hidden, p_hidden, w_last, p_last


def eigf_reference(evs, w_first, p_first, w_hidden, p_hidden, w_last, p_last):
    """Pure-JAX, torch-layout reference (features-last, two-pass BN)."""
    evs = jnp.asarray(evs, jnp.float32).reshape(-1, 1)
    F = w_first.shape[0]
    L = w_hidden.shape[1]
    outs = []
    for j in range(F):
        Ws = [w_first[j]] + [w_hidden[j, l] for l in range(L)] + [w_last[j].T]
        Ps = [p_first[j]] + [p_hidden[j, l] for l in range(L)] + [p_last[j]]
        h = evs
        for W, P in zip(Ws, Ps):
            b, g, beta = P[:, 0], P[:, 1], P[:, 2]
            h = h @ W.T + b[None, :]
            mean = jnp.mean(h, axis=0, keepdims=True)
            var = jnp.mean((h - mean) ** 2, axis=0, keepdims=True)
            h = (h - mean) * lax.rsqrt(var + BN_EPS) * g[None, :] + beta[None, :]
            h = jnp.maximum(h, 0.0)
        outs.append(h[:, 0])
    return jnp.stack(outs, axis=0)   # (F, N)


if __name__ == "__main__":
    num_filters = 3    # ef_num_filters
    num_hlayers = 2    # ef_num_hlayers
    num_hu = 32        # ef_num_hu
    batch = 200        # total eigenvalue count; not a multiple of 128 on purpose

    key = jax.random.PRNGKey(0)
    key, k_in = jax.random.split(key)
    evs = jax.random.normal(k_in, (batch, 1), jnp.float32)

    params = init_params(key, num_filters, num_hlayers, num_hu)

    fwd = jax.jit(eigf_filters_forward)
    out = jax.block_until_ready(fwd(evs, *params))

    ref = eigf_reference(evs, *params)
    assert out.shape == (num_filters, batch)
    assert jnp.allclose(out, ref, atol=1e-3, rtol=1e-3), float(jnp.max(jnp.abs(out - ref)))

    print("KERNEL_OK")
</pallas_src>

<mosaic_0001>
module attributes {stable_mosaic.version = 11 : i64} {
  func.func @kernel(%arg0: i32, %arg1: memref<1x256xf32, #tpu.memory_space<vmem>>, %arg2: memref<1x32x1xf32, #tpu.memory_space<vmem>>, %arg3: memref<1x32x3xf32, #tpu.memory_space<vmem>>, %arg4: memref<1x2x32x32xf32, #tpu.memory_space<vmem>>, %arg5: memref<1x2x32x3xf32, #tpu.memory_space<vmem>>, %arg6: memref<1x32x1xf32, #tpu.memory_space<vmem>>, %arg7: memref<1x1x3xf32, #tpu.memory_space<vmem>>, %arg8: memref<1x1x256xf32, #tpu.memory_space<vmem>>) attributes {dimension_semantics = [#tpu.dimension_semantics<parallel>], iteration_bounds = array<i64: 3>, scalar_prefetch = 0 : i64, scratch_operands = 0 : i64, tpu.core_type = #tpu.core_type<tc>, window_params = [{pipeline_mode = #tpu.pipeline_mode<synchronous>, transform_indices = @transform_0, window_bounds = array<i64: 1, 256>}, {transform_indices = @transform_1, window_bounds = array<i64: 1, 32, 1>}, {transform_indices = @transform_2, window_bounds = array<i64: 1, 32, 3>}, {transform_indices = @transform_3, window_bounds = array<i64: 1, 2, 32, 32>}, {transform_indices = @transform_4, window_bounds = array<i64: 1, 2, 32, 3>}, {transform_indices = @transform_5, window_bounds = array<i64: 1, 32, 1>}, {transform_indices = @transform_6, window_bounds = array<i64: 1, 1, 3>}, {transform_indices = @transform_7, window_bounds = array<i64: 1, 1, 256>}]} {
    %0 = tpu.iota {dimensions = array<i32: 1>} : vector<1x256xi32>
    %c200_i32 = arith.constant 200 : i32
    %1 = vector.broadcast %c200_i32 : i32 to vector<1x256xi32>
    %2 = arith.cmpi slt, %0, %1 : vector<1x256xi32>
    %c0 = arith.constant 0 : index
    %c0_0 = arith.constant 0 : index
    %3 = vector.load %arg1[%c0, %c0_0] : memref<1x256xf32, #tpu.memory_space<vmem>>, vector<1x256xf32>
    %c0_1 = arith.constant 0 : index
    %c0_2 = arith.constant 0 : index
    %c0_3 = arith.constant 0 : index
    %4 = vector.load %arg2[%c0_1, %c0_2, %c0_3] : memref<1x32x1xf32, #tpu.memory_space<vmem>>, vector<1x32x1xf32>
    %5 = vector.shape_cast %4 : vector<1x32x1xf32> to vector<32x1xf32>
    %6 = vector.broadcast %5 : vector<32x1xf32> to vector<32x256xf32>
    %7 = vector.broadcast %3 : vector<1x256xf32> to vector<32x256xf32>
    %8 = arith.mulf %6, %7 : vector<32x256xf32>
    %c0_4 = arith.constant 0 : index
    %c0_5 = arith.constant 0 : index
    %c0_6 = arith.constant 0 : index
    %9 = vector.load %arg3[%c0_4, %c0_5, %c0_6] : memref<1x32x3xf32, #tpu.memory_space<vmem>>, vector<1x32x3xf32>
    %10 = vector.shape_cast %9 : vector<1x32x3xf32> to vector<32x3xf32>
    %11 = vector.extract_strided_slice %10 {offsets = [0, 0], sizes = [32, 1], strides = [1, 1]} : vector<32x3xf32> to vector<32x1xf32>
    %12 = vector.extract_strided_slice %10 {offsets = [0, 1], sizes = [32, 1], strides = [1, 1]} : vector<32x3xf32> to vector<32x1xf32>
    %13 = vector.extract_strided_slice %10 {offsets = [0, 2], sizes = [32, 1], strides = [1, 1]} : vector<32x3xf32> to vector<32x1xf32>
    %14 = vector.broadcast %11 : vector<32x1xf32> to vector<32x256xf32>
    %15 = arith.addf %8, %14 : vector<32x256xf32>
    %cst = arith.constant 0.000000e+00 : f32
    %16 = vector.shape_cast %2 : vector<1x256xi1> to vector<1x256xi1>
    %17 = vector.broadcast %16 : vector<1x256xi1> to vector<32x256xi1>
    %18 = vector.broadcast %cst : f32 to vector<32x256xf32>
    %19 = arith.select %17, %15, %18 : vector<32x256xi1>, vector<32x256xf32>
    %cst_7 = arith.constant dense<0.000000e+00> : vector<32xf32>
    %20 = vector.multi_reduction <add>, %19, %cst_7 [1] : vector<32x256xf32> to vector<32xf32>
    %21 = vector.shape_cast %20 : vector<32xf32> to vector<32x1xf32>
    %cst_8 = arith.constant 5.000000e-03 : f32
    %22 = vector.broadcast %cst_8 : f32 to vector<32x1xf32>
    %23 = arith.mulf %21, %22 : vector<32x1xf32>
    %24 = arith.mulf %19, %15 : vector<32x256xf32>
    %cst_9 = arith.constant dense<0.000000e+00> : vector<32xf32>
    %25 = vector.multi_reduction <add>, %24, %cst_9 [1] : vector<32x256xf32> to vector<32xf32>
    %26 = vector.shape_cast %25 : vector<32xf32> to vector<32x1xf32>
    %cst_10 = arith.constant 5.000000e-03 : f32
    %27 = vector.broadcast %cst_10 : f32 to vector<32x1xf32>
    %28 = arith.mulf %26, %27 : vector<32x1xf32>
    %29 = arith.mulf %23, %23 : vector<32x1xf32>
    %30 = arith.subf %28, %29 : vector<32x1xf32>
    %cst_11 = arith.constant 9.99999974E-6 : f32
    %31 = vector.broadcast %cst_11 : f32 to vector<32x1xf32>
    %32 = arith.addf %30, %31 : vector<32x1xf32>
    %33 = math.rsqrt %32 : vector<32x1xf32>
    %34 = arith.mulf %12, %33 : vector<32x1xf32>
    %35 = arith.mulf %23, %34 : vector<32x1xf32>
    %36 = arith.subf %13, %35 : vector<32x1xf32>
    %37 = vector.broadcast %34 : vector<32x1xf32> to vector<32x256xf32>
    %38 = arith.mulf %15, %37 : vector<32x256xf32>
    %39 = vector.broadcast %36 : vector<32x1xf32> to vector<32x256xf32>
    %40 = arith.addf %38, %39 : vector<32x256xf32>
    %cst_12 = arith.constant 0.000000e+00 : f32
    %41 = vector.broadcast %cst_12 : f32 to vector<32x256xf32>
    %42 = arith.maximumf %40, %41 : vector<32x256xf32>
    %c0_i32 = arith.constant 0 : i32
    %c0_13 = arith.constant 0 : index
    %43 = arith.index_cast %c0_i32 : i32 to index
    %c0_14 = arith.constant 0 : index
    %c0_15 = arith.constant 0 : index
    %44 = vector.load %arg4[%c0_13, %43, %c0_14, %c0_15] : memref<1x2x32x32xf32, #tpu.memory_space<vmem>>, vector<1x1x32x32xf32>
    %45 = vector.shape_cast %44 : vector<1x1x32x32xf32> to vector<32x32xf32>
    %c0_16 = arith.constant 0 : index
    %46 = arith.index_cast %c0_i32 : i32 to index
    %c0_17 = arith.constant 0 : index
    %c0_18 = arith.constant 0 : index
    %47 = vector.load %arg5[%c0_16, %46, %c0_17, %c0_18] : memref<1x2x32x3xf32, #tpu.memory_space<vmem>>, vector<1x1x32x3xf32>
    %48 = vector.shape_cast %47 : vector<1x1x32x3xf32> to vector<32x3xf32>
    %cst_19 = arith.constant dense<0.000000e+00> : vector<32x256xf32>
    %49 = tpu.matmul %45, %42, %cst_19 {dimension_numbers = #tpu.dot_dimension_numbers<[1], [0], [0], [1], [0, 0, 1, 1], [], []>} : vector<32x32xf32>, vector<32x256xf32>, vector<32x256xf32> -> vector<32x256xf32>
    %50 = vector.extract_strided_slice %48 {offsets = [0, 0], sizes = [32, 1], strides = [1, 1]} : vector<32x3xf32> to vector<32x1xf32>
    %51 = vector.extract_strided_slice %48 {offsets = [0, 1], sizes = [32, 1], strides = [1, 1]} : vector<32x3xf32> to vector<32x1xf32>
    %52 = vector.extract_strided_slice %48 {offsets = [0, 2], sizes = [32, 1], strides = [1, 1]} : vector<32x3xf32> to vector<32x1xf32>
    %53 = vector.broadcast %50 : vector<32x1xf32> to vector<32x256xf32>
    %54 = arith.addf %49, %53 : vector<32x256xf32>
    %cst_20 = arith.constant 0.000000e+00 : f32
    %55 = vector.shape_cast %2 : vector<1x256xi1> to vector<1x256xi1>
    %56 = vector.broadcast %55 : vector<1x256xi1> to vector<32x256xi1>
    %57 = vector.broadcast %cst_20 : f32 to vector<32x256xf32>
    %58 = arith.select %56, %54, %57 : vector<32x256xi1>, vector<32x256xf32>
    %cst_21 = arith.constant dense<0.000000e+00> : vector<32xf32>
    %59 = vector.multi_reduction <add>, %58, %cst_21 [1] : vector<32x256xf32> to vector<32xf32>
    %60 = vector.shape_cast %59 : vector<32xf32> to vector<32x1xf32>
    %cst_22 = arith.constant 5.000000e-03 : f32
    %61 = vector.broadcast %cst_22 : f32 to vector<32x1xf32>
    %62 = arith.mulf %60, %61 : vector<32x1xf32>
    %63 = arith.mulf %58, %54 : vector<32x256xf32>
    %cst_23 = arith.constant dense<0.000000e+00> : vector<32xf32>
    %64 = vector.multi_reduction <add>, %63, %cst_23 [1] : vector<32x256xf32> to vector<32xf32>
    %65 = vector.shape_cast %64 : vector<32xf32> to vector<32x1xf32>
    %cst_24 = arith.constant 5.000000e-03 : f32
    %66 = vector.broadcast %cst_24 : f32 to vector<32x1xf32>
    %67 = arith.mulf %65, %66 : vector<32x1xf32>
    %68 = arith.mulf %62, %62 : vector<32x1xf32>
    %69 = arith.subf %67, %68 : vector<32x1xf32>
    %cst_25 = arith.constant 9.99999974E-6 : f32
    %70 = vector.broadcast %cst_25 : f32 to vector<32x1xf32>
    %71 = arith.addf %69, %70 : vector<32x1xf32>
    %72 = math.rsqrt %71 : vector<32x1xf32>
    %73 = arith.mulf %51, %72 : vector<32x1xf32>
    %74 = arith.mulf %62, %73 : vector<32x1xf32>
    %75 = arith.subf %52, %74 : vector<32x1xf32>
    %76 = vector.broadcast %73 : vector<32x1xf32> to vector<32x256xf32>
    %77 = arith.mulf %54, %76 : vector<32x256xf32>
    %78 = vector.broadcast %75 : vector<32x1xf32> to vector<32x256xf32>
    %79 = arith.addf %77, %78 : vector<32x256xf32>
    %cst_26 = arith.constant 0.000000e+00 : f32
    %80 = vector.broadcast %cst_26 : f32 to vector<32x256xf32>
    %81 = arith.maximumf %79, %80 : vector<32x256xf32>
    %c1_i32 = arith.constant 1 : i32
    %c0_27 = arith.constant 0 : index
    %82 = arith.index_cast %c1_i32 : i32 to index
    %c0_28 = arith.constant 0 : index
    %c0_29 = arith.constant 0 : index
    %83 = vector.load %arg4[%c0_27, %82, %c0_28, %c0_29] : memref<1x2x32x32xf32, #tpu.memory_space<vmem>>, vector<1x1x32x32xf32>
    %84 = vector.shape_cast %83 : vector<1x1x32x32xf32> to vector<32x32xf32>
    %c0_30 = arith.constant 0 : index
    %85 = arith.index_cast %c1_i32 : i32 to index
    %c0_31 = arith.constant 0 : index
    %c0_32 = arith.constant 0 : index
    %86 = vector.load %arg5[%c0_30, %85, %c0_31, %c0_32] : memref<1x2x32x3xf32, #tpu.memory_space<vmem>>, vector<1x1x32x3xf32>
    %87 = vector.shape_cast %86 : vector<1x1x32x3xf32> to vector<32x3xf32>
    %cst_33 = arith.constant dense<0.000000e+00> : vector<32x256xf32>
    %88 = tpu.matmul %84, %81, %cst_33 {dimension_numbers = #tpu.dot_dimension_numbers<[1], [0], [0], [1], [0, 0, 1, 1], [], []>} : vector<32x32xf32>, vector<32x256xf32>, vector<32x256xf32> -> vector<32x256xf32>
    %89 = vector.extract_strided_slice %87 {offsets = [0, 0], sizes = [32, 1], strides = [1, 1]} : vector<32x3xf32> to vector<32x1xf32>
    %90 = vector.extract_strided_slice %87 {offsets = [0, 1], sizes = [32, 1], strides = [1, 1]} : vector<32x3xf32> to vector<32x1xf32>
    %91 = vector.extract_strided_slice %87 {offsets = [0, 2], sizes = [32, 1], strides = [1, 1]} : vector<32x3xf32> to vector<32x1xf32>
    %92 = vector.broadcast %89 : vector<32x1xf32> to vector<32x256xf32>
    %93 = arith.addf %88, %92 : vector<32x256xf32>
    %cst_34 = arith.constant 0.000000e+00 : f32
    %94 = vector.shape_cast %2 : vector<1x256xi1> to vector<1x256xi1>
    %95 = vector.broadcast %94 : vector<1x256xi1> to vector<32x256xi1>
    %96 = vector.broadcast %cst_34 : f32 to vector<32x256xf32>
    %97 = arith.select %95, %93, %96 : vector<32x256xi1>, vector<32x256xf32>
    %cst_35 = arith.constant dense<0.000000e+00> : vector<32xf32>
    %98 = vector.multi_reduction <add>, %97, %cst_35 [1] : vector<32x256xf32> to vector<32xf32>
    %99 = vector.shape_cast %98 : vector<32xf32> to vector<32x1xf32>
    %cst_36 = arith.constant 5.000000e-03 : f32
    %100 = vector.broadcast %cst_36 : f32 to vector<32x1xf32>
    %101 = arith.mulf %99, %100 : vector<32x1xf32>
    %102 = arith.mulf %97, %93 : vector<32x256xf32>
    %cst_37 = arith.constant dense<0.000000e+00> : vector<32xf32>
    %103 = vector.multi_reduction <add>, %102, %cst_37 [1] : vector<32x256xf32> to vector<32xf32>
    %104 = vector.shape_cast %103 : vector<32xf32> to vector<32x1xf32>
    %cst_38 = arith.constant 5.000000e-03 : f32
    %105 = vector.broadcast %cst_38 : f32 to vector<32x1xf32>
    %106 = arith.mulf %104, %105 : vector<32x1xf32>
    %107 = arith.mulf %101, %101 : vector<32x1xf32>
    %108 = arith.subf %106, %107 : vector<32x1xf32>
    %cst_39 = arith.constant 9.99999974E-6 : f32
    %109 = vector.broadcast %cst_39 : f32 to vector<32x1xf32>
    %110 = arith.addf %108, %109 : vector<32x1xf32>
    %111 = math.rsqrt %110 : vector<32x1xf32>
    %112 = arith.mulf %90, %111 : vector<32x1xf32>
    %113 = arith.mulf %101, %112 : vector<32x1xf32>
    %114 = arith.subf %91, %113 : vector<32x1xf32>
    %115 = vector.broadcast %112 : vector<32x1xf32> to vector<32x256xf32>
    %116 = arith.mulf %93, %115 : vector<32x256xf32>
    %117 = vector.broadcast %114 : vector<32x1xf32> to vector<32x256xf32>
    %118 = arith.addf %116, %117 : vector<32x256xf32>
    %cst_40 = arith.constant 0.000000e+00 : f32
    %119 = vector.broadcast %cst_40 : f32 to vector<32x256xf32>
    %120 = arith.maximumf %118, %119 : vector<32x256xf32>
    %c2_i32 = arith.constant 2 : i32
    %c0_41 = arith.constant 0 : index
    %c0_42 = arith.constant 0 : index
    %c0_43 = arith.constant 0 : index
    %121 = vector.load %arg6[%c0_41, %c0_42, %c0_43] : memref<1x32x1xf32, #tpu.memory_space<vmem>>, vector<1x32x1xf32>
    %122 = vector.shape_cast %121 : vector<1x32x1xf32> to vector<32x1xf32>
    %123 = vector.broadcast %122 : vector<32x1xf32> to vector<32x256xf32>
    %124 = arith.mulf %123, %120 : vector<32x256xf32>
    %cst_44 = arith.constant dense<0.000000e+00> : vector<256xf32>
    %125 = vector.multi_reduction <add>, %124, %cst_44 [0] : vector<32x256xf32> to vector<256xf32>
    %126 = vector.shape_cast %125 : vector<256xf32> to vector<1x256xf32>
    %c0_45 = arith.constant 0 : index
    %c0_46 = arith.constant 0 : index
    %c0_47 = arith.constant 0 : index
    %127 = vector.load %arg7[%c0_45, %c0_46, %c0_47] : memref<1x1x3xf32, #tpu.memory_space<vmem>>, vector<1x1x3xf32>
    %128 = vector.shape_cast %127 : vector<1x1x3xf32> to vector<1x3xf32>
    %129 = vector.extract_strided_slice %128 {offsets = [0, 0], sizes = [1, 1], strides = [1, 1]} : vector<1x3xf32> to vector<1x1xf32>
    %130 = vector.extract_strided_slice %128 {offsets = [0, 1], sizes = [1, 1], strides = [1, 1]} : vector<1x3xf32> to vector<1x1xf32>
    %131 = vector.extract_strided_slice %128 {offsets = [0, 2], sizes = [1, 1], strides = [1, 1]} : vector<1x3xf32> to vector<1x1xf32>
    %132 = vector.broadcast %129 : vector<1x1xf32> to vector<1x256xf32>
    %133 = arith.addf %126, %132 : vector<1x256xf32>
    %cst_48 = arith.constant 0.000000e+00 : f32
    %134 = vector.broadcast %cst_48 : f32 to vector<1x256xf32>
    %135 = arith.select %2, %133, %134 : vector<1x256xi1>, vector<1x256xf32>
    %cst_49 = arith.constant dense<0.000000e+00> : vector<1xf32>
    %136 = vector.multi_reduction <add>, %135, %cst_49 [1] : vector<1x256xf32> to vector<1xf32>
    %137 = vector.shape_cast %136 : vector<1xf32> to vector<1x1xf32>
    %cst_50 = arith.constant 5.000000e-03 : f32
    %138 = vector.broadcast %cst_50 : f32 to vector<1x1xf32>
    %139 = arith.mulf %137, %138 : vector<1x1xf32>
    %140 = arith.mulf %135, %133 : vector<1x256xf32>
    %cst_51 = arith.constant dense<0.000000e+00> : vector<1xf32>
    %141 = vector.multi_reduction <add>, %140, %cst_51 [1] : vector<1x256xf32> to vector<1xf32>
    %142 = vector.shape_cast %141 : vector<1xf32> to vector<1x1xf32>
    %cst_52 = arith.constant 5.000000e-03 : f32
    %143 = vector.broadcast %cst_52 : f32 to vector<1x1xf32>
    %144 = arith.mulf %142, %143 : vector<1x1xf32>
    %145 = arith.mulf %139, %139 : vector<1x1xf32>
    %146 = arith.subf %144, %145 : vector<1x1xf32>
    %cst_53 = arith.constant 9.99999974E-6 : f32
    %147 = vector.broadcast %cst_53 : f32 to vector<1x1xf32>
    %148 = arith.addf %146, %147 : vector<1x1xf32>
    %149 = math.rsqrt %148 : vector<1x1xf32>
    %150 = arith.mulf %130, %149 : vector<1x1xf32>
    %151 = arith.mulf %139, %150 : vector<1x1xf32>
    %152 = arith.subf %131, %151 : vector<1x1xf32>
    %153 = vector.broadcast %150 : vector<1x1xf32> to vector<1x256xf32>
    %154 = arith.mulf %133, %153 : vector<1x256xf32>
    %155 = vector.broadcast %152 : vector<1x1xf32> to vector<1x256xf32>
    %156 = arith.addf %154, %155 : vector<1x256xf32>
    %cst_54 = arith.constant 0.000000e+00 : f32
    %157 = vector.broadcast %cst_54 : f32 to vector<1x256xf32>
    %158 = arith.maximumf %156, %157 : vector<1x256xf32>
    %c0_55 = arith.constant 0 : index
    %c0_56 = arith.constant 0 : index
    %c0_57 = arith.constant 0 : index
    %159 = vector.load %arg8[%c0_55, %c0_56, %c0_57] : memref<1x1x256xf32, #tpu.memory_space<vmem>>, vector<1x1x256xf32>
    %160 = vector.shape_cast %159 : vector<1x1x256xf32> to vector<1x256xf32>
    %161 = vector.shape_cast %158 : vector<1x256xf32> to vector<1x1x256xf32>
    tpu.vector_store %arg8[%c0_55, %c0_56, %c0_57], %161 {strides = array<i32>} : memref<1x1x256xf32, #tpu.memory_space<vmem>>, vector<1x1x256xf32>,
    return
  }
  func.func @transform_0(%arg0: i32) -> (i32, i32) {
    %c0_i32 = arith.constant 0 : i32
    %c0_i32_0 = arith.constant 0 : i32
    %c0_i32_1 = arith.constant 0 : i32
    return %c0_i32, %c0_i32_0 : i32, i32
  }
  func.func @transform_1(%arg0: i32) -> (i32, i32, i32) {
    %c0_i32 = arith.constant 0 : i32
    %c0_i32_0 = arith.constant 0 : i32
    %c0_i32_1 = arith.constant 0 : i32
    return %arg0, %c0_i32, %c0_i32_0 : i32, i32, i32
  }
  func.func @transform_2(%arg0: i32) -> (i32, i32, i32) {
    %c0_i32 = arith.constant 0 : i32
    %c0_i32_0 = arith.constant 0 : i32
    %c0_i32_1 = arith.constant 0 : i32
    return %arg0, %c0_i32, %c0_i32_0 : i32, i32, i32
  }
  func.func @transform_3(%arg0: i32) -> (i32, i32, i32, i32) {
    %c0_i32 = arith.constant 0 : i32
    %c0_i32_0 = arith.constant 0 : i32
    %c0_i32_1 = arith.constant 0 : i32
    %c0_i32_2 = arith.constant 0 : i32
    return %arg0, %c0_i32, %c0_i32_0, %c0_i32_1 : i32, i32, i32, i32
  }
  func.func @transform_4(%arg0: i32) -> (i32, i32, i32, i32) {
    %c0_i32 = arith.constant 0 : i32
    %c0_i32_0 = arith.constant 0 : i32
    %c0_i32_1 = arith.constant 0 : i32
    %c0_i32_2 = arith.constant 0 : i32
    return %arg0, %c0_i32, %c0_i32_0, %c0_i32_1 : i32, i32, i32, i32
  }
  func.func @transform_5(%arg0: i32) -> (i32, i32, i32) {
    %c0_i32 = arith.constant 0 : i32
    %c0_i32_0 = arith.constant 0 : i32
    %c0_i32_1 = arith.constant 0 : i32
    return %arg0, %c0_i32, %c0_i32_0 : i32, i32, i32
  }
  func.func @transform_6(%arg0: i32) -> (i32, i32, i32) {
    %c0_i32 = arith.constant 0 : i32
    %c0_i32_0 = arith.constant 0 : i32
    %c0_i32_1 = arith.constant 0 : i32
    return %arg0, %c0_i32, %c0_i32_0 : i32, i32, i32
  }
  func.func @transform_7(%arg0: i32) -> (i32, i32, i32) {
    %c0_i32 = arith.constant 0 : i32
    %c0_i32_0 = arith.constant 0 : i32
    %c0_i32_1 = arith.constant 0 : i32
    return %arg0, %c0_i32, %c0_i32_0 : i32, i32, i32
  }
}

</mosaic_0001>

<bundles_post_ra>
// kernel: eigf_filters_forward.1
= control target key start
LH: loop header
LB: loop body
LE: loop exit
PB: predicated region body
PF: predicated region fallthrough
CT: control target
= control target key end

     0   :  { %s1584_s24 = smov 0   ;;  %s1953_s0 = inlined_call_operand.vmem [shape: f32[1,256], index: 0, kind: input, shape index: {}]   ;;  %s1954_s1 = inlined_call_operand.vmem [shape: f32[3,32,1], index: 1, kind: input, shape index: {}]   ;;  %s1955_s2 = inlined_call_operand.vmem [shape: f32[3,32,3], index: 2, kind: input, shape index: {}]   ;;  %s1956_s3 = inlined_call_operand.vmem [shape: f32[3,2,32,32], index: 3, kind: input, shape index: {}]   ;;  %s1957_s4 = inlined_call_operand.vmem [shape: f32[3,2,32,3], index: 4, kind: input, shape index: {}]   ;;  %s1958_s5 = inlined_call_operand.vmem [shape: f32[3,32,1], index: 5, kind: input, shape index: {}]   ;;  %s1959_s6 = inlined_call_operand.vmem [shape: f32[3,1,3], index: 6, kind: input, shape index: {}]   ;;  %s1960_s7 = inlined_call_operand.vmem [shape: f32[3,1,256], index: 7, kind: output, shape index: {}]  }
   0x1 LB: > { %s1427_s25 = sadd.s32 4294967295, %s1536_s24   ;;  %p1431_p0 = scmp.ge.s32.totalorder %s1536_s24, 1  ;;  %s1536_s24 = sphi %s1584_s24, %s17_s24  }
   0x2   : > { %p285_p1 = scmp.lt.s32.totalorder %s1536_s24, 4 }
   0x4   : > { %p286_p2 = pnand %p1431_p0, %p285_p1 }
   0x5   : > { %p339_p3 = scmp.lt.s32.totalorder (!%p286_p2), %s1427_s25, 2  ;;  %s1540_s12 = smov (!%p286_p2), 1  }
   0x6   : > { %289 = sbr.rel (%p286_p2) target bundleno = 2276 (0x8e4), region = 48 }
   0xb   : > { %v1538_v0 = vmov 0   ;;  %s1962_s25 = smov (!%p339_p3, %s1427_s25), 2  ;;  %v371_v9 = vlaneseq  ;;  %v376_v13 = vld [vmem:[%s1953_s0] sm:$0x3]  ;;  %v1539_v62 = vmov 1   ;;  %vm640_vm1 = vcmask 261120  }
   0xc   : > { %1481 = vset.pattern.permute.xlu1 %v1538_v0  ;;  %1480 = vset.pattern.permute.xlu0 %v1538_v0  ;;  %s1597_s26 = sshll.u32 %s1962_s25, 5  ;;  %s1463_s13 = sshll.u32 %s1962_s25, 6 }
   0xd   : > { %s348_s29 = scalar_lea.vmem %s1955_s2, %s1597_s26  ;;  %s343_s9 = scalar_lea.vmem %s1954_s1, %s1597_s26  ;;  %v1620_v10 = vshrl.u32 %v371_v9, 7  ;;  %v372_v14 = vand.u32 127, %v371_v9  ;;  %vm1314_vm2 = vcmp.lt.s32.totalorder %v371_v9, 256 }
   0xe   : > { %v1607_v1 = vld [vmem:[%s348_s29 + $0x18] sm:$0xff]  ;;  %v379_v3 = vld [vmem:[%s343_s9 + $0x10] sm:$0xff]  ;;  %v378_v4 = vld [vmem:[%s343_s9 + $0x8] sm:$0xff]  ;;  %s1704_s16 = scalar_lea.vmem %s1957_s4, %s1463_s13  ;;  %s1737_s19 = scalar_lea.vmem %s1956_s3, %s1463_s13 }
   0xf   : > { %v380_v2 = vld [vmem:[%s343_s9 + $0x18] sm:$0xff]  ;;  %441 = vperm.xlu1 %1481, %v1607_v1   ;;  %v1610_v5 = vld [vmem:[%s348_s29 + $0x10] sm:$0xff]  ;;  %v377_v6 = vld [vmem:[%s343_s9] sm:$0xff]  ;;  %v1623_v11 = vsub.s32 0, %v1620_v10  ;;  %v408_v12 = vsub.s32 1, %v1620_v10  ;;  %v1631_v17 = vadd.s32 128, %v372_v14  ;;  %s1900_s22 = scalar_lea.vmem %s1958_s5, %s1597_s26  ;;  %s366_s27 = scalar_lea.vmem %s1959_s6, %s1962_s25 }
  0x10   : > { %398 = vperm.xlu0 %1480, %v380_v2   ;;  %v1613_v7 = vld [vmem:[%s348_s29 + $0x8] sm:$0xff]  ;;  %v1615_v8 = vld [vmem:[%s348_s29] sm:$0xff]  ;;  %s1442_s28 = sshll.u32 %s1962_s25, 1 }
  0x11   : > { %v405_v15 = vrot.slane %v376_v13, %v1623_v11  ;;  %v409_v16 = vrot.slane %v376_v13, %v408_v12  ;;  %vm375_vm0 = vcmp.lt.s32.totalorder %v1631_v17, 200  ;;  %s370_s8 = scalar_lea.vmem %s1960_s7, %s1442_s28 }
  0x13   : > { %388 = vperm.xlu1 %1481, %v378_v4  }
  0x14   : > { %393 = vperm.xlu0 %1480, %v379_v3  }
  0x17   : > { %383 = vperm.xlu1 %1481, %v377_v6  }
  0x18   : > { %436 = vperm.xlu0 %1480, %v1610_v5  }
  0x1b   : > { %426 = vperm.xlu1 %1481, %v1615_v8  }
  0x1c   : > { %431 = vperm.xlu0 %1480, %v1613_v7  }
  0x1f   : > { %1483 = vset.pattern.permute.xlu1 %v1539_v62 }
  0x20   : > { %1482 = vset.pattern.permute.xlu0 %v1539_v62 }
  0x8a   : > { %v442_v18 = vpop.permute.xlu1 %441 }
  0x8b   : > { %v399_v19 = vpop.permute.xlu0 %398 }
  0x8c   : > { %v418_v20 = vmul.f32 %v405_v15, %v399_v19  ;;  %v419_v21 = vmul.f32 %v409_v16, %v399_v19 }
  0x8e   : > { %v1634_v22 = vadd.f32 %v442_v18, %v418_v20  ;;  %v1636_v23 = vadd.f32 %v442_v18, %v419_v21  ;;  %v389_v25 = vpop.permute.xlu1 %388 }
  0x8f   : > { %v394_v24 = vpop.permute.xlu0 %393  ;;  %v414_v34 = vmul.f32 %v405_v15, %v389_v25  ;;  %v415_v35 = vmul.f32 %v409_v16, %v389_v25 }
  0x90   : > { %v463_v26 = vsel %vm375_vm0, %v1636_v23, 0.0  ;;  %v416_v27 = vmul.f32 %v405_v15, %v394_v24  ;;  %v417_v28 = vmul.f32 %v409_v16, %v394_v24  ;;  %v486_v46 = vmul.f32 %v1634_v22, %v1634_v22 }
  0x91   : > { %v473_v29 = vadd.f32 %v463_v26, %v1634_v22  ;;  %v487_v47 = vmul.f32 %v463_v26, %v1636_v23 }
  0x92   : > { %v384_v31 = vpop.permute.xlu1 %383 }
  0x93   : > { %v437_v30 = vpop.permute.xlu0 %436  ;;  %474 = vadd.xlane.f32.xlu0 %v473_v29  ;;  %v413_v44 = vmul.f32 %v409_v16, %v384_v31  ;;  %v412_v53 = vmul.f32 %v405_v15, %v384_v31  ;;  %v497_v55 = vadd.f32 %v487_v47, %v486_v46 }
  0x94   : > { %v1642_v32 = vadd.f32 %v437_v30, %v416_v27  ;;  %v1644_v33 = vadd.f32 %v437_v30, %v417_v28 }
  0x96   : > { %v461_v36 = vsel %vm375_vm0, %v1644_v33, 0.0  ;;  %v484_v39 = vmul.f32 %v1642_v32, %v1642_v32  ;;  %v427_v43 = vpop.permute.xlu1 %426 }
  0x97   : > { %v432_v37 = vpop.permute.xlu0 %431  ;;  %v470_v38 = vadd.f32 %v461_v36, %v1642_v32  ;;  %v485_v40 = vmul.f32 %v461_v36, %v1644_v33  ;;  %v1667_v52 = vadd.f32 %v427_v43, %v413_v44  ;;  %v1669_v54 = vadd.f32 %v427_v43, %v412_v53 }
  0x98   : > { %v1653_v41 = vadd.f32 %v432_v37, %v414_v34  ;;  %v1655_v42 = vadd.f32 %v432_v37, %v415_v35 }
  0x99   : > { %471 = vadd.xlane.f32.xlu1 %v470_v38  ;;  %v494_v49 = vadd.f32 %v485_v40, %v484_v39  ;;  %v457_v57 = vsel %vm375_vm0, %v1667_v52, 0.0  ;;  %v480_v59 = vmul.f32 %v1669_v54, %v1669_v54 }
  0x9a   : > { %v459_v45 = vsel %vm375_vm0, %v1655_v42, 0.0  ;;  %v482_v50 = vmul.f32 %v1653_v41, %v1653_v41  ;;  %v464_v58 = vadd.f32 %v457_v57, %v1669_v54  ;;  %v481_v60 = vmul.f32 %v457_v57, %v1667_v52 }
  0x9b   : > { %v467_v48 = vadd.f32 %v459_v45, %v1653_v41  ;;  %v483_v51 = vmul.f32 %v459_v45, %v1655_v42 }
  0x9c   : > { %v488_v61 = vadd.f32 %v481_v60, %v480_v59 }
  0x9d   : > { %468 = vadd.xlane.f32.xlu0 %v467_v48  ;;  %495 = vadd.xlane.f32.xlu1 %v494_v49  ;;  %v491_v56 = vadd.f32 %v483_v51, %v482_v50 }
  0xa1   : > { %498 = vadd.xlane.f32.xlu0 %v497_v55  ;;  %492 = vadd.xlane.f32.xlu1 %v491_v56  ;;  %v1541_v56 = vmov 2  }
  0xa5   : > { %465 = vadd.xlane.f32.xlu0 %v464_v58 }
  0xa9   : > { %489 = vadd.xlane.f32.xlu0 %v488_v61 }
 0x11c   : > { %v475_v63 = vpop.xlane.xlu0 %474 }
 0x11d   : > { %v479_v4 = vmul.f32 0.005, %v475_v63 }
 0x11f   : > { %v507_v18 = vmul.f32 %v479_v4, %v479_v4 }
 0x122   : > { %v472_v2 = vpop.xlane.xlu1 %471 }
 0x123   : > { %v478_v3 = vmul.f32 0.005, %v472_v2 }
 0x125   : > { %v506_v13 = vmul.f32 %v478_v3, %v478_v3 }
 0x126   : > { %v469_v6 = vpop.xlane.xlu0 %468  ;;  %v496_v12 = vpop.xlane.xlu1 %495 }
 0x127   : > { %v477_v14 = vmul.f32 0.005, %v469_v6  ;;  %v502_v15 = vmul.f32 0.005, %v496_v12 }
 0x129   : > { %v510_v16 = vsub.f32 %v502_v15, %v506_v13  ;;  %v505_v21 = vmul.f32 %v477_v14, %v477_v14 }
 0x12a   : > { %v499_v19 = vpop.xlane.xlu0 %498  ;;  %v493_v20 = vpop.xlane.xlu1 %492 }
 0x12b   : > { %v514_v24 = vadd.f32 1e-05, %v510_v16  ;;  %v503_v25 = vmul.f32 0.005, %v499_v19  ;;  %v501_v26 = vmul.f32 0.005, %v493_v20 }
 0x12d   : > { %1504 = vrsqrt.f32 %v514_v24  ;;  %v511_v27 = vsub.f32 %v503_v25, %v507_v18  ;;  %v509_v28 = vsub.f32 %v501_v26, %v505_v21 }
 0x12e   : > { %v466_v29 = vpop.xlane.xlu0 %465 }
 0x12f   : > { %v515_v30 = vadd.f32 1e-05, %v511_v27  ;;  %v513_v31 = vadd.f32 1e-05, %v509_v28  ;;  %v476_v34 = vmul.f32 0.005, %v466_v29 }
 0x131   : > { %1506 = vrsqrt.f32 %v515_v30  ;;  %v504_v36 = vmul.f32 %v476_v34, %v476_v34 }
 0x132   : > { %1508 = vrsqrt.f32 %v513_v31  ;;  %v490_v35 = vpop.xlane.xlu0 %489 }
 0x133   : > { %v500_v37 = vmul.f32 0.005, %v490_v35 }
 0x135   : > { %v508_v38 = vsub.f32 %v500_v37, %v504_v36 }
 0x137   : > { %v512_v39 = vadd.f32 1e-05, %v508_v38 }
 0x139   : > { %1510 = vrsqrt.f32 %v512_v39 }
 0x13a   : > { %v1505_v40 = vpop.eup %1504 }
 0x13b   : > { %v522_v43 = vmul.f32 %v1505_v40, %v1610_v5 }
 0x13d   : > { %v526_v44 = vmul.f32 %v522_v43, %v478_v3 }
 0x13e   : > { %v1507_v45 = vpop.eup %1506 }
 0x13f   : > { %v1509_v46 = vpop.eup %1508  ;;  %536 = vrot.lane.b32.xlu0 %v526_v44, %s1540_s12  ;;  %v523_v47 = vmul.f32 %v1507_v45, %v1607_v1  ;;  %v614_v44 = vld [vmem:[%s1737_s19 + $0x10] sm:$0xff]  ;;  %v615_v45 = vld [vmem:[%s1737_s19 + $0x18] sm:$0xff] }
 0x140   : > { %v521_v49 = vmul.f32 %v1509_v46, %v1613_v7 }
 0x141   : > { %v527_v48 = vmul.f32 %v523_v47, %v479_v4  ;;  %v1542_v4 = vmov 0.0  }
 0x142   : > { %v525_v50 = vmul.f32 %v521_v49, %v477_v14  ;;  %717 = vmatprep.mubr.f32.mxu0 %v1542_v4  ;;  %1004 = vmatprep.mubr.f32.mxu1 %v1542_v4 }
 0x143   : > { %538 = vrot.lane.b32.xlu1 %v527_v48, %s1540_s12  ;;  %565 = vperm.xlu0 %1482, %v523_v47  }
 0x146   : > { %v1511_v51 = vpop.eup %1510 }
 0x147   : > { %555 = vperm.xlu0 %1482, %v521_v49   ;;  %534 = vrot.lane.b32.xlu1 %v525_v50, %s1540_s12  ;;  %v520_v53 = vmul.f32 %v1511_v51, %v1615_v8 }
 0x149   : > { %v524_v55 = vmul.f32 %v520_v53, %v476_v34 }
 0x14b   : > { %550 = vperm.xlu0 %1482, %v520_v53   ;;  %532 = vrot.lane.b32.xlu1 %v524_v55, %s1540_s12 }
 0x14f   : > { %560 = vperm.xlu1 %1483, %v522_v43   ;;  %1485 = vset.pattern.permute.xlu0 %v1541_v56  ;;  %v613_v43 = vld [vmem:[%s1737_s19 + $0x8] sm:$0xff] }
 0x153   : > { %1484 = vset.pattern.permute.xlu1 %v1541_v56 }
 0x1b1   : > { %v537_v59 = vpop.permute.xlu0 %536 }
 0x1b2   : > { %v546_v61 = vsub.f32 %v1610_v5, %v537_v59  ;;  %v1711_v5 = vld [vmem:[%s1704_s16 + $0x8] sm:$0xff] }
 0x1b5   : > { %v539_v57 = vpop.permute.xlu1 %538 }
 0x1b6   : > { %v547_v58 = vsub.f32 %v1607_v1, %v539_v57  ;;  %v1707_v1 = vld [vmem:[%s1704_s16 + $0x18] sm:$0xff] }
 0x1b8   : > { %593 = vperm.xlu1 %1484, %v547_v58  }
 0x1b9   : > { %v535_v60 = vpop.permute.xlu1 %534 }
 0x1ba   : > { %v545_v2 = vsub.f32 %v1613_v7, %v535_v60  ;;  %v1714_v7 = vld [vmem:[%s1704_s16 + $0x10] sm:$0xff] }
 0x1bc   : > { %588 = vperm.xlu1 %1484, %v546_v61  }
 0x1bd   : > { %v533_v63 = vpop.permute.xlu1 %532 }
 0x1be   : > { %v544_v3 = vsub.f32 %v1615_v8, %v533_v63  ;;  %v1719_v8 = vld [vmem:[%s1704_s16] sm:$0xff]  ;;  %v566_v6 = vpop.permute.xlu0 %565 }
 0x1bf   : > { %v574_v14 = vmul.f32 %v566_v6, %v1634_v22  ;;  %v575_v15 = vmul.f32 %v566_v6, %v1636_v23 }
 0x1c0   : > { %583 = vperm.xlu1 %1484, %v545_v2   ;;  %578 = vperm.xlu0 %1485, %v544_v3  }
 0x1c2   : > { %v556_v13 = vpop.permute.xlu0 %555 }
 0x1c3   : > { %v570_v30 = vmul.f32 %v556_v13, %v1653_v41  ;;  %v571_v22 = vmul.f32 %v556_v13, %v1655_v42 }
 0x1c4   : > { %1486 = vset.pattern.permute.xlu1 %v1538_v0  ;;  %1487 = vset.pattern.permute.xlu0 %v1538_v0 }
 0x1c5   : > { %637 = vperm.xlu1 %1486, %v1707_v1   ;;  %627 = vperm.xlu0 %1487, %v1711_v5  }
 0x1c6   : > { %v551_v26 = vpop.permute.xlu0 %550 }
 0x1c7   : > { %v569_v23 = vmul.f32 %v551_v26, %v1667_v52 }
 0x1c9   : > { %632 = vperm.xlu1 %1486, %v1714_v7   ;;  %1489 = vset.pattern.permute.xlu0 %v1539_v62 }
 0x1ca   : > { %v561_v12 = vpop.permute.xlu1 %560 }
 0x1cb   : > { %v572_v20 = vmul.f32 %v561_v12, %v1642_v32  ;;  %v573_v21 = vmul.f32 %v561_v12, %v1644_v33  ;;  %v568_v32 = vmul.f32 %v551_v26, %v1669_v54  ;;  %v612_v54 = vld [vmem:[%s1737_s19] sm:$0xff] }
 0x1cd   : > { %622 = vperm.xlu1 %1486, %v1719_v8  }
 0x1d1   : > { %1488 = vset.pattern.permute.xlu1 %v1539_v62 }
 0x233   : > { %v594_v16 = vpop.permute.xlu1 %593 }
 0x234   : > { %v602_v18 = vadd.f32 %v594_v16, %v574_v14  ;;  %v603_v19 = vadd.f32 %v594_v16, %v575_v15 }
 0x236   : > { %v611_v24 = vmax.f32 %v603_v19, 0.0  ;;  %v610_v25 = vmax.f32 %v602_v18, 0.0 }
 0x237   : > { %v589_v27 = vpop.permute.xlu1 %588 }
 0x238   : > { %v600_v28 = vadd.f32 %v589_v27, %v572_v20  ;;  %v601_v29 = vadd.f32 %v589_v27, %v573_v21  ;;  %677 = vmatprep.subr.mxu0 %v611_v24 }
 0x239   : > { %678 = vmatpush1.msra.mxu0 %v610_v25 }
 0x23a   : > { %v608_v31 = vmax.f32 %v600_v28, 0.0  ;;  %v609_v34 = vmax.f32 %v601_v29, 0.0 }
 0x23b   : > { %v579_v33 = vpop.permute.xlu0 %578  ;;  %v584_v35 = vpop.permute.xlu1 %583 }
 0x23c   : > { %v597_v36 = vadd.f32 %v579_v33, %v569_v23  ;;  %v598_v37 = vadd.f32 %v584_v35, %v570_v30  ;;  %v599_v38 = vadd.f32 %v584_v35, %v571_v22  ;;  %679 = vmatprep.subr.mxu0 %v609_v34  ;;  %v596_v39 = vadd.f32 %v579_v33, %v568_v32 }
 0x23d   : > { %680 = vmatpush1.msra.mxu0 %v608_v31 }
 0x23e   : > { %v606_v40 = vmax.f32 %v598_v37, 0.0  ;;  %v607_v41 = vmax.f32 %v599_v38, 0.0  ;;  %v605_v42 = vmax.f32 %v597_v36, 0.0  ;;  %v604_v52 = vmax.f32 %v596_v39, 0.0 }
 0x240   : > { %681 = vmatprep.subr.mxu0 %v607_v41  ;;  %v638_v47 = vpop.permute.xlu1 %637  ;;  %v628_v50 = vpop.permute.xlu0 %627 }
 0x241   : > { %682 = vmatpush1.msra.mxu0 %v606_v40 }
 0x242   : > { %683 = vmatprep.subr.mxu0 %v605_v42 }
 0x243   : > { %684 = vmatpush1.msra.mxu0 %v604_v52 }
 0x244   : > { %1443 = vmatmul.mubr.msk.f32.vlgmr.msra.gmra.mxu0 %vm640_vm1, %v612_v54  ;;  %v633_v55 = vpop.permute.xlu1 %632 }
 0x245   : > { %723 = vmatprep.mubr.f32.mxu0 %v1542_v4 }
 0x248   : > { %1444 = vmatmul.mubr.msk.f32.gmra.mxu0 %vm640_vm1, %v613_v43  ;;  %v623_v12 = vpop.permute.xlu1 %622 }
 0x249   : > { %729 = vmatprep.mubr.f32.mxu0 %v1542_v4 }
 0x24c   : > { %1445 = vmatmul.mubr.msk.f32.gmra.mxu0 %vm640_vm1, %v614_v44 }
 0x24d   : > { %735 = vmatprep.mubr.f32.mxu0 %v1542_v4 }
 0x250   : > { %1446 = vmatmul.mubr.msk.f32.gmra.mxu0 %vm640_vm1, %v615_v45 }
 0x304   : > { %v719_v46 = vpop.f32.mrf.mxu0 }
 0x305   : > { %v1783_v28 = vadd.f32 %v719_v46, %v623_v12 }
 0x306   : > { %v721_v48 = vpop.f32.mrf.mxu0 }
 0x307   : > { %v1767_v16 = vadd.f32 %v721_v48, %v623_v12  ;;  %v766_v32 = vmul.f32 %v1783_v28, %v1783_v28 }
 0x308   : > { %v725_v49 = vpop.f32.mrf.mxu0 }
 0x309   : > { %v1752_v57 = vadd.f32 %v725_v49, %v628_v50  ;;  %v743_v27 = vsel %vm375_vm0, %v1767_v16, 0.0 }
 0x30a   : > { %v727_v51 = vpop.f32.mrf.mxu0  ;;  %v750_v22 = vadd.f32 %v743_v27, %v1783_v28  ;;  %v767_v31 = vmul.f32 %v743_v27, %v1767_v16 }
 0x30b   : > { %v1750_v53 = vadd.f32 %v727_v51, %v628_v50  ;;  %v768_v34 = vmul.f32 %v1752_v57, %v1752_v57 }
 0x30c   : > { %v731_v58 = vpop.f32.mrf.mxu0  ;;  %v774_v35 = vadd.f32 %v767_v31, %v766_v32 }
 0x30d   : > { %v745_v59 = vsel %vm375_vm0, %v1750_v53, 0.0  ;;  %v1760_v2 = vadd.f32 %v731_v58, %v633_v55 }
 0x30e   : > { %v733_v60 = vpop.f32.mrf.mxu0  ;;  %v753_v61 = vadd.f32 %v745_v59, %v1752_v57  ;;  %v769_v23 = vmul.f32 %v745_v59, %v1750_v53 }
 0x30f   : > { %v1758_v63 = vadd.f32 %v733_v60, %v633_v55  ;;  %v770_v20 = vmul.f32 %v1760_v2, %v1760_v2 }
 0x310   : > { %v737_v3 = vpop.f32.mrf.mxu0  ;;  %754 = vadd.xlane.f32.xlu1 %v753_v61  ;;  %v777_v33 = vadd.f32 %v769_v23, %v768_v34 }
 0x311   : > { %v747_v6 = vsel %vm375_vm0, %v1758_v63, 0.0  ;;  %v1771_v19 = vadd.f32 %v737_v3, %v638_v47 }
 0x312   : > { %v739_v13 = vpop.f32.mrf.mxu0  ;;  %v756_v14 = vadd.f32 %v747_v6, %v1760_v2  ;;  %v771_v15 = vmul.f32 %v747_v6, %v1758_v63 }
 0x313   : > { %v1769_v18 = vadd.f32 %v739_v13, %v638_v47  ;;  %v772_v29 = vmul.f32 %v1771_v19, %v1771_v19 }
 0x314   : > { %757 = vadd.xlane.f32.xlu0 %v756_v14  ;;  %v780_v25 = vadd.f32 %v771_v15, %v770_v20 }
 0x315   : > { %v749_v21 = vsel %vm375_vm0, %v1769_v18, 0.0 }
 0x316   : > { %v759_v24 = vadd.f32 %v749_v21, %v1771_v19  ;;  %v773_v26 = vmul.f32 %v749_v21, %v1769_v18 }
 0x318   : > { %760 = vadd.xlane.f32.xlu1 %v759_v24  ;;  %781 = vadd.xlane.f32.xlu0 %v780_v25  ;;  %v783_v30 = vadd.f32 %v773_v26, %v772_v29 }
 0x31c   : > { %784 = vadd.xlane.f32.xlu0 %v783_v30  ;;  %751 = vadd.xlane.f32.xlu1 %v750_v22 }
 0x320   : > { %778 = vadd.xlane.f32.xlu0 %v777_v33  ;;  %775 = vadd.xlane.f32.xlu1 %v774_v35 }
 0x399   : > { %v755_v36 = vpop.xlane.xlu1 %754 }
 0x39a   : > { %v763_v43 = vmul.f32 0.005, %v755_v36 }
 0x39c   : > { %v791_v51 = vmul.f32 %v763_v43, %v763_v43 }
 0x39d   : > { %v758_v37 = vpop.xlane.xlu0 %757 }
 0x39e   : > { %v764_v38 = vmul.f32 0.005, %v758_v37 }
 0x3a0   : > { %v792_v41 = vmul.f32 %v764_v38, %v764_v38 }
 0x3a1   : > { %v782_v39 = vpop.xlane.xlu0 %781  ;;  %v761_v40 = vpop.xlane.xlu1 %760 }
 0x3a2   : > { %v788_v42 = vmul.f32 0.005, %v782_v39  ;;  %v765_v52 = vmul.f32 0.005, %v761_v40  ;;  %v1815_v40 = vld [vmem:[%s1704_s16 + $0x28] sm:$0xff] }
 0x3a4   : > { %v796_v54 = vsub.f32 %v788_v42, %v792_v41  ;;  %v793_v47 = vmul.f32 %v765_v52, %v765_v52 }
 0x3a5   : > { %v785_v44 = vpop.xlane.xlu0 %784  ;;  %v752_v45 = vpop.xlane.xlu1 %751 }
 0x3a6   : > { %v800_v46 = vadd.f32 1e-05, %v796_v54  ;;  %v789_v48 = vmul.f32 0.005, %v785_v44  ;;  %v762_v49 = vmul.f32 0.005, %v752_v45 }
 0x3a8   : > { %1512 = vrsqrt.f32 %v800_v46  ;;  %v797_v50 = vsub.f32 %v789_v48, %v793_v47  ;;  %v790_v60 = vmul.f32 %v762_v49, %v762_v49 }
 0x3a9   : > { %v779_v55 = vpop.xlane.xlu0 %778  ;;  %v776_v58 = vpop.xlane.xlu1 %775 }
 0x3aa   : > { %v801_v59 = vadd.f32 1e-05, %v797_v50  ;;  %v787_v61 = vmul.f32 0.005, %v779_v55  ;;  %v786_v3 = vmul.f32 0.005, %v776_v58 }
 0x3ac   : > { %1514 = vrsqrt.f32 %v801_v59  ;;  %v795_v6 = vsub.f32 %v787_v61, %v791_v51  ;;  %v794_v12 = vsub.f32 %v786_v3, %v790_v60 }
 0x3ae   : > { %v799_v13 = vadd.f32 1e-05, %v795_v6  ;;  %v798_v14 = vadd.f32 1e-05, %v794_v12 }
 0x3b0   : > { %1516 = vrsqrt.f32 %v799_v13 }
 0x3b1   : > { %1518 = vrsqrt.f32 %v798_v14 }
 0x3b5   : > { %v1513_v15 = vpop.eup %1512 }
 0x3b6   : > { %v808_v20 = vmul.f32 %v1513_v15, %v1714_v7  ;;  %v1447_v15 = vld [vmem:[%s1737_s19 + $0x20] sm:$0xff] }
 0x3b8   : > { %v812_v21 = vmul.f32 %v808_v20, %v764_v38 }
 0x3b9   : > { %v1515_v24 = vpop.eup %1514 }
 0x3ba   : > { %822 = vrot.lane.b32.xlu1 %v812_v21, %s1540_s12  ;;  %v809_v25 = vmul.f32 %v1515_v24, %v1707_v1  ;;  %v1449_v21 = vld [vmem:[%s1737_s19 + $0x30] sm:$0xff]  ;;  %v1450_v24 = vld [vmem:[%s1737_s19 + $0x38] sm:$0xff] }
 0x3bc   : > { %v813_v26 = vmul.f32 %v809_v25, %v765_v52 }
 0x3bd   : > { %v1517_v27 = vpop.eup %1516 }
 0x3be   : > { %v1519_v29 = vpop.eup %1518  ;;  %824 = vrot.lane.b32.xlu0 %v813_v26, %s1540_s12  ;;  %v807_v30 = vmul.f32 %v1517_v27, %v1711_v5 }
 0x3bf   : > { %v806_v22 = vmul.f32 %v1519_v29, %v1719_v8 }
 0x3c0   : > { %v811_v23 = vmul.f32 %v807_v30, %v763_v43 }
 0x3c1   : > { %v810_v31 = vmul.f32 %v806_v22, %v762_v49 }
 0x3c2   : > { %820 = vrot.lane.b32.xlu1 %v811_v23, %s1540_s12 }
 0x3c3   : > { %818 = vrot.lane.b32.xlu0 %v810_v31, %s1540_s12 }
 0x3c6   : > { %851 = vperm.xlu1 %1488, %v809_v25  }
 0x3c7   : > { %846 = vperm.xlu0 %1489, %v808_v20   ;;  %v1448_v20 = vld [vmem:[%s1737_s19 + $0x28] sm:$0xff] }
 0x3ca   : > { %841 = vperm.xlu1 %1488, %v807_v30  }
 0x3cb   : > { %1490 = vset.pattern.permute.xlu0 %v1541_v56 }
 0x3ce   : > { %836 = vperm.xlu1 %1488, %v806_v22  }
 0x3d2   : > { %1491 = vset.pattern.permute.xlu1 %v1541_v56 }
 0x42c   : > { %v823_v34 = vpop.permute.xlu1 %822 }
 0x42d   : > { %v832_v32 = vsub.f32 %v1714_v7, %v823_v34  ;;  %v1811_v7 = vld [vmem:[%s1704_s16 + $0x20] sm:$0xff] }
 0x42f   : > { %874 = vperm.xlu0 %1490, %v832_v32  }
 0x430   : > { %v825_v33 = vpop.permute.xlu0 %824 }
 0x431   : > { %v833_v35 = vsub.f32 %v1707_v1, %v825_v33  ;;  %v1818_v1 = vld [vmem:[%s1704_s16 + $0x30] sm:$0xff] }
 0x433   : > { %879 = vperm.xlu1 %1491, %v833_v35  }
 0x434   : > { %v821_v36 = vpop.permute.xlu1 %820 }
 0x435   : > { %v819_v37 = vpop.permute.xlu0 %818  ;;  %v831_v38 = vsub.f32 %v1711_v5, %v821_v36  ;;  %v1823_v5 = vld [vmem:[%s1704_s16 + $0x38] sm:$0xff] }
 0x436   : > { %v830_v39 = vsub.f32 %v1719_v8, %v819_v37 }
 0x437   : > { %869 = vperm.xlu1 %1491, %v831_v38  }
 0x438   : > { %864 = vperm.xlu0 %1490, %v830_v39  }
 0x43b   : > { %1492 = vset.pattern.permute.xlu1 %v1538_v0 }
 0x43c   : > { %1493 = vset.pattern.permute.xlu0 %v1538_v0  ;;  %910 = vperm.xlu1 %1492, %v1811_v7  }
 0x43d   : > { %915 = vperm.xlu0 %1493, %v1815_v40  }
 0x440   : > { %920 = vperm.xlu1 %1492, %v1818_v1  }
 0x441   : > { %1494 = vset.pattern.permute.xlu0 %v1539_v62  ;;  %v852_v8 = vpop.permute.xlu1 %851 }
 0x442   : > { %v847_v42 = vpop.permute.xlu0 %846  ;;  %v860_v44 = vmul.f32 %v852_v8, %v1771_v19  ;;  %v861_v45 = vmul.f32 %v852_v8, %v1769_v18 }
 0x443   : > { %v859_v43 = vmul.f32 %v847_v42, %v1758_v63  ;;  %v858_v46 = vmul.f32 %v847_v42, %v1760_v2 }
 0x444   : > { %925 = vperm.xlu1 %1492, %v1823_v5  }
 0x445   : > { %v842_v41 = vpop.permute.xlu1 %841 }
 0x446   : > { %v856_v55 = vmul.f32 %v842_v41, %v1752_v57  ;;  %v857_v58 = vmul.f32 %v842_v41, %v1750_v53 }
 0x448   : > { %1495 = vset.pattern.permute.xlu1 %v1539_v62 }
 0x449   : > { %v837_v52 = vpop.permute.xlu1 %836 }
 0x44a   : > { %v854_v61 = vmul.f32 %v837_v52, %v1783_v28  ;;  %v855_v63 = vmul.f32 %v837_v52, %v1767_v16 }
 0x4aa   : > { %v875_v54 = vpop.permute.xlu0 %874 }
 0x4ab   : > { %v887_v48 = vadd.f32 %v875_v54, %v859_v43  ;;  %v886_v51 = vadd.f32 %v875_v54, %v858_v46 }
 0x4ad   : > { %v895_v3 = vmax.f32 %v887_v48, 0.0  ;;  %v894_v12 = vmax.f32 %v886_v51, 0.0 }
 0x4ae   : > { %v880_v47 = vpop.permute.xlu1 %879 }
 0x4af   : > { %v888_v49 = vadd.f32 %v880_v47, %v860_v44  ;;  %v889_v50 = vadd.f32 %v880_v47, %v861_v45 }
 0x4b1   : > { %v897_v59 = vmax.f32 %v889_v50, 0.0  ;;  %v896_v60 = vmax.f32 %v888_v49, 0.0 }
 0x4b2   : > { %v870_v19 = vpop.permute.xlu1 %869 }
 0x4b3   : > { %v865_v18 = vpop.permute.xlu0 %864  ;;  %v884_v2 = vadd.f32 %v870_v19, %v856_v55  ;;  %v885_v6 = vadd.f32 %v870_v19, %v857_v58  ;;  %964 = vmatprep.subr.mxu1 %v897_v59 }
 0x4b4   : > { %v882_v13 = vadd.f32 %v865_v18, %v854_v61  ;;  %v883_v14 = vadd.f32 %v865_v18, %v855_v63  ;;  %965 = vmatpush1.msra.mxu1 %v896_v60 }
 0x4b5   : > { %v892_v57 = vmax.f32 %v884_v2, 0.0  ;;  %v893_v53 = vmax.f32 %v885_v6, 0.0  ;;  %966 = vmatprep.subr.mxu1 %v895_v3 }
 0x4b6   : > { %967 = vmatpush1.msra.mxu1 %v894_v12  ;;  %v891_v28 = vmax.f32 %v883_v14, 0.0  ;;  %v890_v16 = vmax.f32 %v882_v13, 0.0 }
 0x4b7   : > { %968 = vmatprep.subr.mxu1 %v893_v53  ;;  %v911_v26 = vpop.permute.xlu1 %910 }
 0x4b8   : > { %969 = vmatpush1.msra.mxu1 %v892_v57  ;;  %v916_v23 = vpop.permute.xlu0 %915 }
 0x4b9   : > { %970 = vmatprep.subr.mxu1 %v891_v28 }
 0x4ba   : > { %971 = vmatpush1.msra.mxu1 %v890_v16 }
 0x4bb   : > { %1455 = vmatmul.mubr.msk.f32.vlgmr.msra.gmra.mxu1 %vm640_vm1, %v1447_v15  ;;  %v921_v35 = vpop.permute.xlu1 %920 }
 0x4bc   : > { %1010 = vmatprep.mubr.f32.mxu1 %v1542_v4 }
 0x4bf   : > { %1456 = vmatmul.mubr.msk.f32.gmra.mxu1 %vm640_vm1, %v1448_v20  ;;  %v926_v47 = vpop.permute.xlu1 %925 }
 0x4c0   : > { %1016 = vmatprep.mubr.f32.mxu1 %v1542_v4 }
 0x4c3   : > { %1457 = vmatmul.mubr.msk.f32.gmra.mxu1 %vm640_vm1, %v1449_v21 }
 0x4c4   : > { %1022 = vmatprep.mubr.f32.mxu1 %v1542_v4 }
 0x4c7   : > { %1458 = vmatmul.mubr.msk.f32.gmra.mxu1 %vm640_vm1, %v1450_v24 }
 0x57b   : > { %v1006_v25 = vpop.f32.mrf.mxu1 }
 0x57c   : > { %v1849_v30 = vadd.f32 %v1006_v25, %v911_v26 }
 0x57d   : > { %v1008_v27 = vpop.f32.mrf.mxu1 }
 0x57e   : > { %v1847_v29 = vadd.f32 %v1008_v27, %v911_v26  ;;  %v1053_v38 = vmul.f32 %v1849_v30, %v1849_v30 }
 0x57f   : > { %v1012_v22 = vpop.f32.mrf.mxu1 }
 0x580   : > { %v1030_v31 = vsel %vm375_vm0, %v1847_v29, 0.0  ;;  %v1858_v36 = vadd.f32 %v1012_v22, %v916_v23 }
 0x581   : > { %v1014_v34 = vpop.f32.mrf.mxu1  ;;  %v1037_v32 = vadd.f32 %v1030_v31, %v1849_v30  ;;  %v1054_v4 = vmul.f32 %v1030_v31, %v1847_v29 }
 0x582   : > { %v1856_v33 = vadd.f32 %v1014_v34, %v916_v23  ;;  %v1055_v45 = vmul.f32 %v1858_v36, %v1858_v36 }
 0x583   : > { %v1018_v37 = vpop.f32.mrf.mxu1  ;;  %1038 = vadd.xlane.f32.xlu0 %v1037_v32  ;;  %v1061_v42 = vadd.f32 %v1054_v4, %v1053_v38 }
 0x584   : > { %v1032_v39 = vsel %vm375_vm0, %v1856_v33, 0.0  ;;  %v1869_v43 = vadd.f32 %v1018_v37, %v921_v35 }
 0x585   : > { %v1020_v8 = vpop.f32.mrf.mxu1  ;;  %v1040_v41 = vadd.f32 %v1032_v39, %v1858_v36  ;;  %v1056_v52 = vmul.f32 %v1032_v39, %v1856_v33 }
 0x586   : > { %v1867_v54 = vadd.f32 %v1020_v8, %v921_v35  ;;  %v1057_v59 = vmul.f32 %v1869_v43, %v1869_v43 }
 0x587   : > { %v1024_v44 = vpop.f32.mrf.mxu1  ;;  %1041 = vadd.xlane.f32.xlu1 %v1040_v41  ;;  %1062 = vadd.xlane.f32.xlu0 %v1061_v42  ;;  %v1064_v49 = vadd.f32 %v1056_v52, %v1055_v45 }
 0x588   : > { %v1034_v46 = vsel %vm375_vm0, %v1867_v54, 0.0  ;;  %v1880_v58 = vadd.f32 %v1024_v44, %v926_v47 }
 0x589   : > { %v1026_v48 = vpop.f32.mrf.mxu1  ;;  %v1043_v50 = vadd.f32 %v1034_v46, %v1869_v43  ;;  %v1058_v51 = vmul.f32 %v1034_v46, %v1867_v54 }
 0x58a   : > { %v1878_v55 = vadd.f32 %v1026_v48, %v926_v47  ;;  %v1059_v3 = vmul.f32 %v1880_v58, %v1880_v58 }
 0x58b   : > { %1065 = vadd.xlane.f32.xlu1 %v1064_v49  ;;  %1044 = vadd.xlane.f32.xlu0 %v1043_v50  ;;  %v1067_v61 = vadd.f32 %v1058_v51, %v1057_v59 }
 0x58c   : > { %v1036_v60 = vsel %vm375_vm0, %v1878_v55, 0.0 }
 0x58d   : > { %v1046_v63 = vadd.f32 %v1036_v60, %v1880_v58  ;;  %v1060_v19 = vmul.f32 %v1036_v60, %v1878_v55 }
 0x58f   : > { %1068 = vadd.xlane.f32.xlu1 %v1067_v61  ;;  %1047 = vadd.xlane.f32.xlu0 %v1046_v63  ;;  %v1070_v18 = vadd.f32 %v1060_v19, %v1059_v3  ;;  %v1185_v61 = vld [vmem:[%s1900_s22] sm:$0xff]  ;;  %v1186_v63 = vld [vmem:[%s1900_s22 + $0x8] sm:$0xff] }
 0x593   : > { %1071 = vadd.xlane.f32.xlu0 %v1070_v18 }
 0x60c   : > { %v1039_v2 = vpop.xlane.xlu0 %1038 }
 0x60d   : > { %v1049_v6 = vmul.f32 0.005, %v1039_v2 }
 0x60f   : > { %v1077_v14 = vmul.f32 %v1049_v6, %v1049_v6 }
 0x610   : > { %v1063_v12 = vpop.xlane.xlu0 %1062  ;;  %v1042_v13 = vpop.xlane.xlu1 %1041 }
 0x611   : > { %v1073_v57 = vmul.f32 0.005, %v1063_v12  ;;  %v1050_v53 = vmul.f32 0.005, %v1042_v13 }
 0x613   : > { %v1081_v28 = vsub.f32 %v1073_v57, %v1077_v14  ;;  %v1078_v21 = vmul.f32 %v1050_v53, %v1050_v53  ;;  %v1188_v57 = vld [vmem:[%s1900_s22 + $0x18] sm:$0xff] }
 0x614   : > { %v1045_v16 = vpop.xlane.xlu0 %1044  ;;  %v1066_v15 = vpop.xlane.xlu1 %1065 }
 0x615   : > { %v1085_v20 = vadd.f32 1e-05, %v1081_v28  ;;  %v1051_v24 = vmul.f32 0.005, %v1045_v16  ;;  %v1074_v25 = vmul.f32 0.005, %v1066_v15 }
 0x617   : > { %1520 = vrsqrt.f32 %v1085_v20  ;;  %v1082_v26 = vsub.f32 %v1074_v25, %v1078_v21  ;;  %v1079_v23 = vmul.f32 %v1051_v24, %v1051_v24 }
 0x618   : > { %v1048_v27 = vpop.xlane.xlu0 %1047  ;;  %v1069_v22 = vpop.xlane.xlu1 %1068 }
 0x619   : > { %v1086_v31 = vadd.f32 1e-05, %v1082_v26  ;;  %v1052_v34 = vmul.f32 0.005, %v1048_v27  ;;  %v1075_v32 = vmul.f32 0.005, %v1069_v22 }
 0x61b   : > { %1522 = vrsqrt.f32 %v1086_v31  ;;  %v1083_v4 = vsub.f32 %v1075_v32, %v1079_v23  ;;  %v1080_v37 = vmul.f32 %v1052_v34, %v1052_v34 }
 0x61c   : > { %v1072_v35 = vpop.xlane.xlu0 %1071 }
 0x61d   : > { %v1087_v38 = vadd.f32 1e-05, %v1083_v4  ;;  %v1076_v39 = vmul.f32 0.005, %v1072_v35 }
 0x61f   : > { %1524 = vrsqrt.f32 %v1087_v38  ;;  %v1084_v8 = vsub.f32 %v1076_v39, %v1080_v37 }
 0x621   : > { %v1088_v41 = vadd.f32 1e-05, %v1084_v8 }
 0x623   : > { %1526 = vrsqrt.f32 %v1088_v41 }
 0x624   : > { %v1521_v42 = vpop.eup %1520 }
 0x625   : > { %v1093_v52 = vmul.f32 %v1521_v42, %v1811_v7 }
 0x627   : > { %v1097_v44 = vmul.f32 %v1093_v52, %v1049_v6 }
 0x628   : > { %v1523_v45 = vpop.eup %1522 }
 0x629   : > { %1105 = vrot.lane.b32.xlu1 %v1097_v44, %s1540_s12  ;;  %v1094_v46 = vmul.f32 %v1523_v45, %v1815_v40 }
 0x62b   : > { %v1098_v47 = vmul.f32 %v1094_v46, %v1050_v53  ;;  %v1187_v53 = vld [vmem:[%s1900_s22 + $0x10] sm:$0xff] }
 0x62c   : > { %v1525_v48 = vpop.eup %1524 }
 0x62d   : > { %1107 = vrot.lane.b32.xlu0 %v1098_v47, %s1540_s12  ;;  %v1095_v49 = vmul.f32 %v1525_v48, %v1818_v1 }
 0x62f   : > { %v1099_v50 = vmul.f32 %v1095_v49, %v1051_v24 }
 0x630   : > { %v1527_v51 = vpop.eup %1526 }
 0x631   : > { %1123 = vperm.xlu0 %1494, %v1093_v52   ;;  %1109 = vrot.lane.b32.xlu1 %v1099_v50, %s1540_s12  ;;  %v1096_v59 = vmul.f32 %v1527_v51, %v1823_v5 }
 0x633   : > { %v1100_v60 = vmul.f32 %v1096_v59, %v1052_v34 }
 0x635   : > { %1111 = vrot.lane.b32.xlu1 %v1100_v60, %s1540_s12  ;;  %1496 = vset.pattern.permute.xlu0 %v1538_v0 }
 0x636   : > { %1191 = vperm.xlu0 %1496, %v1185_v61  }
 0x639   : > { %1128 = vperm.xlu1 %1495, %v1094_v46  }
 0x63a   : > { %1498 = vset.pattern.permute.xlu0 %v1541_v56 }
 0x63d   : > { %1133 = vperm.xlu1 %1495, %v1095_v49  }
 0x641   : > { %1138 = vperm.xlu1 %1495, %v1096_v59  }
 0x645   : > { %1497 = vset.pattern.permute.xlu1 %v1538_v0 }
 0x646   : > { %1196 = vperm.xlu1 %1497, %v1186_v63  }
 0x64a   : > { %1499 = vset.pattern.permute.xlu1 %v1541_v56 }
 0x69b   : > { %v1106_v19 = vpop.permute.xlu1 %1105 }
 0x69c   : > { %v1117_v3 = vsub.f32 %v1811_v7, %v1106_v19  ;;  %v1924_v7 = vld [vmem:[%s366_s27] sm:$0x1] }
 0x69e   : > { %1151 = vperm.xlu0 %1498, %v1117_v3  }
 0x69f   : > { %v1108_v18 = vpop.permute.xlu0 %1107 }
 0x6a0   : > { %v1118_v2 = vsub.f32 %v1815_v40, %v1108_v18 }
 0x6a2   : > { %1156 = vperm.xlu1 %1499, %v1118_v2  }
 0x6a3   : > { %v1110_v6 = vpop.permute.xlu1 %1109 }
 0x6a4   : > { %v1119_v12 = vsub.f32 %v1818_v1, %v1110_v6 }
 0x6a6   : > { %1161 = vperm.xlu0 %1498, %v1119_v12  }
 0x6a7   : > { %v1112_v13 = vpop.permute.xlu1 %1111 }
 0x6a8   : > { %v1120_v14 = vsub.f32 %v1823_v5, %v1112_v13 }
 0x6aa   : > { %1166 = vperm.xlu1 %1499, %v1120_v14   ;;  %1501 = vset.pattern.permute.xlu0 %v1538_v0 }
 0x6ab   : > { %1206 = vperm.xlu0 %1501, %v1188_v57  }
 0x6ac   : > { %v1124_v5 = vpop.permute.xlu0 %1123 }
 0x6ad   : > { %v1142_v25 = vmul.f32 %v1124_v5, %v1847_v29 }
 0x6ae   : > { %1500 = vset.pattern.permute.xlu1 %v1538_v0 }
 0x6af   : > { %1201 = vperm.xlu1 %1500, %v1187_v53   ;;  %1503 = vset.pattern.permute.xlu0 %v1541_v56  ;;  %v1141_v56 = vmul.f32 %v1124_v5, %v1849_v30 }
 0x6b1   : > { %v1192_v16 = vpop.permute.xlu0 %1191 }
 0x6b3   : > { %1238 = vperm.xlu1 %1500, %v1924_v7  }
 0x6b4   : > { %v1129_v40 = vpop.permute.xlu1 %1128 }
 0x6b5   : > { %v1143_v20 = vmul.f32 %v1129_v40, %v1858_v36  ;;  %v1144_v21 = vmul.f32 %v1129_v40, %v1856_v33 }
 0x6b7   : > { %1502 = vset.pattern.permute.xlu1 %v1539_v62 }
 0x6b8   : > { %v1134_v1 = vpop.permute.xlu1 %1133 }
 0x6b9   : > { %v1145_v31 = vmul.f32 %v1134_v1, %v1869_v43  ;;  %v1146_v34 = vmul.f32 %v1134_v1, %v1867_v54 }
 0x6bc   : > { %v1139_v28 = vpop.permute.xlu1 %1138 }
 0x6bd   : > { %v1147_v36 = vmul.f32 %v1139_v28, %v1880_v58  ;;  %v1148_v33 = vmul.f32 %v1139_v28, %v1878_v55 }
 0x6c1   : > { %v1197_v15 = vpop.permute.xlu1 %1196 }
 0x719   : > { %v1152_v0 = vpop.permute.xlu0 %1151 }
 0x71a   : > { %v1169_v22 = vadd.f32 %v1152_v0, %v1141_v56  ;;  %v1170_v62 = vadd.f32 %v1152_v0, %v1142_v25 }
 0x71c   : > { %v1177_v35 = vmax.f32 %v1169_v22, 0.0  ;;  %v1178_v37 = vmax.f32 %v1170_v62, 0.0 }
 0x71d   : > { %v1157_v24 = vpop.permute.xlu1 %1156 }
 0x71e   : > { %v1171_v26 = vadd.f32 %v1157_v24, %v1143_v20  ;;  %v1172_v27 = vadd.f32 %v1157_v24, %v1144_v21  ;;  %v1209_v52 = vmul.f32 %v1192_v16, %v1177_v35  ;;  %v1210_v44 = vmul.f32 %v1192_v16, %v1178_v37 }
 0x720   : > { %v1179_v32 = vmax.f32 %v1171_v26, 0.0  ;;  %v1180_v4 = vmax.f32 %v1172_v27, 0.0 }
 0x721   : > { %v1162_v23 = vpop.permute.xlu0 %1161 }
 0x722   : > { %v1173_v30 = vadd.f32 %v1162_v23, %v1145_v31  ;;  %v1174_v38 = vadd.f32 %v1162_v23, %v1146_v34  ;;  %v1211_v41 = vmul.f32 %v1197_v15, %v1179_v32  ;;  %v1212_v42 = vmul.f32 %v1197_v15, %v1180_v4 }
 0x724   : > { %v1181_v43 = vmax.f32 %v1173_v30, 0.0  ;;  %v1182_v45 = vmax.f32 %v1174_v38, 0.0  ;;  %v1217_v58 = vadd.f32 %v1211_v41, %v1209_v52  ;;  %v1226_v49 = vadd.f32 %v1212_v42, %v1210_v44 }
 0x725   : > { %v1167_v29 = vpop.permute.xlu1 %1166  ;;  %v1543_v30 = vmov 1966171168  }
 0x726   : > { %v1175_v39 = vadd.f32 %v1167_v29, %v1147_v36  ;;  %v1176_v8 = vadd.f32 %v1167_v29, %v1148_v33  ;;  %v1207_v47 = vpop.permute.xlu0 %1206  ;;  %v1298_v38 = vunpack.c.l.s4 %v1543_v30 }
 0x728   : > { %v1183_v54 = vmax.f32 %v1175_v39, 0.0  ;;  %v1184_v46 = vmax.f32 %v1176_v8, 0.0  ;;  %v1299_v41 = vunpack.c.0.s8 %v1298_v38 }
 0x72a   : > { %v1202_v48 = vpop.permute.xlu1 %1201  ;;  %v1215_v51 = vmul.f32 %v1207_v47, %v1183_v54  ;;  %v1216_v59 = vmul.f32 %v1207_v47, %v1184_v46 }
 0x72b   : > { %v1213_v55 = vmul.f32 %v1202_v48, %v1181_v43  ;;  %v1214_v50 = vmul.f32 %v1202_v48, %v1182_v45  ;;  %v1302_v43 = vsub.s32 %v1299_v41, %v1620_v10 }
 0x72d   : > { %v1218_v60 = vadd.f32 %v1217_v58, %v1213_v55  ;;  %v1227_v61 = vadd.f32 %v1226_v49, %v1214_v50 }
 0x72e   : > { %v1239_v53 = vpop.permute.xlu1 %1238 }
 0x72f   : > { %v1219_v63 = vadd.f32 %v1218_v60, %v1215_v51  ;;  %v1228_v19 = vadd.f32 %v1227_v61, %v1216_v59  ;;  %v1244_v16 = vrot.slane %v1239_v53, %v1623_v11 }
 0x731   : > { %v1220_v3 = vrot.slane %v1219_v63, 4  ;;  %v1229_v18 = vrot.slane %v1228_v19, 4 }
 0x733   : > { %v1221_v2 = vadd.f32 %v1220_v3, %v1219_v63  ;;  %v1230_v6 = vadd.f32 %v1229_v18, %v1228_v19 }
 0x735   : > { %v1222_v12 = vrot.slane %v1221_v2, 2  ;;  %v1231_v13 = vrot.slane %v1230_v6, 2 }
 0x737   : > { %v1223_v14 = vadd.f32 %v1222_v12, %v1221_v2  ;;  %v1232_v57 = vadd.f32 %v1231_v13, %v1230_v6 }
 0x739   : > { %v1224_v40 = vrot.slane %v1223_v14, 1  ;;  %v1233_v1 = vrot.slane %v1232_v57, 1 }
 0x73b   : > { %v1225_v5 = vadd.f32 %v1224_v40, %v1223_v14  ;;  %v1234_v28 = vadd.f32 %v1233_v1, %v1232_v57 }
 0x73d   : > { %v1245_v15 = vadd.f32 %v1244_v16, %v1225_v5  ;;  %v1246_v20 = vadd.f32 %v1244_v16, %v1234_v28 }
 0x73f   : > { %v1248_v21 = vsel %vm375_vm0, %v1246_v20, 0.0  ;;  %v1253_v0 = vmul.f32 %v1245_v15, %v1245_v15 }
 0x740   : > { %v1249_v24 = vadd.f32 %v1248_v21, %v1245_v15  ;;  %v1254_v56 = vmul.f32 %v1248_v21, %v1246_v20 }
 0x742   : > { %1250 = vadd.xlane.f32.xlu0 %v1249_v24  ;;  %v1255_v25 = vadd.f32 %v1254_v56, %v1253_v0 }
 0x744   : > { %1256 = vadd.xlane.f32.xlu1 %v1255_v25 }
 0x7cb   : > { %v1251_v26 = vpop.xlane.xlu0 %1250 }
 0x7cc   : > { %v1252_v27 = vmul.f32 0.005, %v1251_v26 }
 0x7cd   : > { %v1257_v22 = vpop.xlane.xlu1 %1256 }
 0x7ce   : > { %v1259_v62 = vmul.f32 %v1252_v27, %v1252_v27  ;;  %v1258_v23 = vmul.f32 0.005, %v1257_v22 }
 0x7d0   : > { %v1260_v31 = vsub.f32 %v1258_v23, %v1259_v62 }
 0x7d2   : > { %v1261_v34 = vadd.f32 1e-05, %v1260_v31 }
 0x7d4   : > { %1528 = vrsqrt.f32 %v1261_v34 }
 0x7e1   : > { %v1529_v32 = vpop.eup %1528 }
 0x7e2   : > { %v1263_v4 = vmul.f32 %v1529_v32, %v1924_v7 }
 0x7e4   : > { %1272 = vperm.xlu1 %1502, %v1263_v4   ;;  %v1264_v17 = vmul.f32 %v1263_v4, %v1252_v27 }
 0x7e6   : > { %1266 = vrot.lane.b32.xlu0 %v1264_v17, %s1540_s12 }
 0x858   : > { %v1267_v36 = vpop.permute.xlu0 %1266 }
 0x859   : > { %v1269_v33 = vsub.f32 %v1924_v7, %v1267_v36 }
 0x85b   : > { %1283 = vperm.xlu0 %1503, %v1269_v33  }
 0x85f   : > { %v1273_v35 = vpop.permute.xlu1 %1272 }
 0x860   : > { %v1278_v37 = vrot.slane %v1273_v35, %v1623_v11 }
 0x862   : > { %v1279_v39 = vmul.f32 %v1278_v37, %v1245_v15  ;;  %v1280_v8 = vmul.f32 %v1278_v37, %v1246_v20 }
 0x8d6   : > { %v1284_v29 = vpop.permute.xlu0 %1283 }
 0x8d7   : > { %v1289_v42 = vrot.slane %v1284_v29, %v1623_v11 }
 0x8d9   : > { %v1290_v52 = vadd.f32 %v1289_v42, %v1279_v39  ;;  %v1291_v44 = vadd.f32 %v1289_v42, %v1280_v8 }
 0x8db   : > { %v1292_v45 = vmax.f32 %v1290_v52, 0.0  ;;  %v1293_v54 = vmax.f32 %v1291_v44, 0.0 }
 0x8dd   : > { %v1296_v7 = vcombine.low %v1292_v45, %v1293_v54 }
 0x8df   : > { %v1303_v46 = vrot.slane %v1296_v7, %v1302_v43 }
 0x8e1   : > { %v1310_v47 = vrot.slane %v1303_v46, %v1302_v43 }
 0x8e3   : > { %1316 = vst.msk [vmem:[%s370_s8] sm:$0x3] %vm1314_vm2, %v1310_v47 }
 0x8e4 PF: > { %s17_s24 = sadd.s32 1, %s1536_s24  }
 0x8e5   : > { %p14_p4 = scmp.ge.s32.totalorder %s17_s24, 5  }
 0x8e7   :  { %16 = sbr.rel (!%p14_p4) target bundleno = 1 (0x1), region = 95 }

</bundles_post_ra>
